<compile_context>
chip_gen: v5e
topology: v5e:2x2
jax: 0.10.0
libtpu: 0.0.40
codegen_flags: <defaults>
</compile_context>

<pallas_src>
import jax
import jax.numpy as jnp
from jax import lax
from jax.experimental import pallas as pl
from jax.experimental.pallas import tpu as pltpu


def _round_down(v: int, m: int) -> int:
    return (v // m) * m


def _vmem_capacity_bytes() -> int:
    try:
        return int(pltpu.get_tpu_info().vmem_capacity_bytes)
    except Exception:
        return 64 * 1024 * 1024  # conservative (v7x-sized) fallback


def _pad_last_kernel_1d(x_ref, o_ref):
    # x_ref: (TR, L), o_ref: (TR, L + size). Two disjoint writes: copy the
    # data region, zero only the pad tail (no zero-then-overwrite traffic).
    L = x_ref.shape[-1]
    o_ref[:, :L] = x_ref[...]
    o_ref[:, L:] = jnp.zeros(
        (o_ref.shape[0], o_ref.shape[-1] - L), dtype=o_ref.dtype
    )


def _make_pad_kernel_2d(L: int, tl: int):
    def kernel(x_ref, o_ref):
        # Output lane block j covers columns [j*tl, (j+1)*tl) of the padded
        # array. Columns >= L are pad -> zero. For fully-pad output blocks the
        # input block index is clamped in the index_map and masked off here;
        # jnp.where is a select, so garbage in the masked branch is harmless.
        j = pl.program_id(1)
        col0 = j * tl
        cols = col0 + lax.broadcasted_iota(jnp.int32, o_ref.shape, 1)
        x = x_ref[...]
        o_ref[...] = jnp.where(cols < L, x, jnp.zeros_like(x))

    return kernel


def padding_last_1d(x: jax.Array, size: int, *, row_tile=None, lane_tile=None,
                    force_pallas: bool = False) -> jax.Array:
    """Pallas equivalent of F.pad(x, (0, size))."""
    if size < 0:
        raise ValueError("pad size must be non-negative")
    if size == 0:
        return x

    orig_shape = x.shape
    L = int(orig_shape[-1])
    Lp = L + int(size)
    rows = 1
    for d in orig_shape[:-1]:
        rows *= int(d)

    itemsize = jnp.dtype(x.dtype).itemsize
    out_bytes = rows * Lp * itemsize
    pad_cfg = [(0, 0)] * (x.ndim - 1) + [(0, size)]

    # Degenerate shapes -> XLA pad.
    if rows == 0 or L == 0:
        return jnp.pad(x, pad_cfg)

    # Fast path: tiny totals (launch/step overhead dominates) or lane-sparse
    # outputs (Lp < one 128-lane vreg -> masked stores / narrow DMA).
    if not force_pallas and (out_bytes < (1 << 20) or Lp < 128):
        return jnp.pad(x, pad_cfg)

    x2d = x.reshape(rows, L)

    # Sublane multiple for this dtype (8 for 4B, 16 for 2B, 32 for 1B types).
    sub = max(8, 32 // itemsize)
    # Per-step byte target for (input tile + output tile). 8 MiB/step keeps
    # the ~0.35 us per-step overhead below a few percent even at v7x's
    # ~3.2 TB/s, while double-buffered (2 x 8 MiB) + headroom stays well under
    # v7x's 64 MiB VMEM.
    step_target = 8 * 1024 * 1024
    vmem_cap = _vmem_capacity_bytes()
    vmem_budget = int(0.75 * vmem_cap)

    row_bytes = (L + Lp) * itemsize  # in+out bytes per row per step

    use_2d = lane_tile is not None or (rows >= sub and sub * row_bytes > step_target)

    if not use_2d:
        # ------------------------- 1-D row-tiled path -------------------------
        if row_tile is not None:
            tr = max(sub, _round_down(int(row_tile), sub))
            # Never request more than the physical VMEM can double-buffer.
            max_tr = max(sub, _round_down(
                max(1, (vmem_budget - (1 << 20)) // (2 * row_bytes)), sub))
            tr = min(tr, max_tr)
            tr = min(tr, rows) if rows >= sub else rows
        else:
            tr_bytes = max(1, step_target // row_bytes)
            # Guarantee a multi-step grid so the pipeline overlaps read/write
            # and v7x's two TensorCores both get work on the parallel axis.
            if rows >= 8 * sub:
                min_steps = 8
            elif rows >= 4 * sub:
                min_steps = 4
            else:
                min_steps = 1
            tr = min(tr_bytes, pl.cdiv(rows, min_steps))
            if rows < sub:
                tr = rows
            else:
                tr = max(sub, _round_down(min(tr, rows), sub))

        grid = (pl.cdiv(rows, tr),)
        in_specs = [pl.BlockSpec((tr, L), lambda i: (i, 0))]
        out_specs = pl.BlockSpec((tr, Lp), lambda i: (i, 0))
        kernel = _pad_last_kernel_1d
        step_bytes = tr * row_bytes
        dim_sem = ("parallel",)
    else:
        # ---------------------- 2-D (row, lane) tiled path ---------------------
        # Used when even a minimal row tile over the full last dim would blow
        # the per-step budget (very long last dims), or when forced for tests.
        if rows < sub:
            tr = rows
        else:
            tr = max(sub, _round_down(min(rows, 256), sub))
        if lane_tile is not None:
            tl = max(128, _round_down(int(lane_tile), 128))
        else:
            tl = max(128, _round_down(step_target // (2 * tr * itemsize), 128))
        nlb_in = pl.cdiv(L, tl)

        def in_map(i, j):
            # Clamp: fully-pad output lane blocks reuse the last valid input
            # block (its data is masked to zero in the kernel).
            return (i, jnp.minimum(j, nlb_in - 1))

        grid = (pl.cdiv(rows, tr), pl.cdiv(Lp, tl))
        in_specs = [pl.BlockSpec((tr, tl), in_map)]
        out_specs = pl.BlockSpec((tr, tl), lambda i, j: (i, j))
        kernel = _make_pad_kernel_2d(L, tl)
        step_bytes = tr * 2 * tl * itemsize
        dim_sem = ("parallel", "parallel")

    # Scoped VMEM: double-buffered (in + out) tiles + 1 MiB headroom, clamped
    # to 75% of the chip's physical VMEM (64 MiB v7x, 128 MiB v5e/v6e).
    vmem_bytes = 2 * step_bytes + (1 << 20)
    vmem_bytes = int(min(max(vmem_bytes, 1 << 20), vmem_budget))

    cost = pl.CostEstimate(
        flops=0,
        transcendentals=0,
        bytes_accessed=rows * L * itemsize + rows * Lp * itemsize,
    )

    out2d = pl.pallas_call(
        kernel,
        out_shape=jax.ShapeDtypeStruct((rows, Lp), x.dtype),
        grid=grid,
        in_specs=in_specs,
        out_specs=out_specs,
        compiler_params=pltpu.CompilerParams(
            # NOTE(v7x): "parallel" lets Mosaic shard the row axis across both
            # TensorCores; switch to pltpu.CORE_PARALLEL if profiling shows
            # the grid is not being split.
            dimension_semantics=dim_sem,
            vmem_limit_bytes=vmem_bytes,
        ),
        cost_estimate=cost,
    )(x2d)

    return out2d.reshape(*orig_shape[:-1], Lp)


if __name__ == "__main__":
    key = jax.random.PRNGKey(0)

    # --- test 1: small module-like shape, Pallas 1-D path forced ------------
    B, C, L = 2, 4, 16
    pad_size = 8
    x = jax.random.normal(key, (B, C, L), dtype=jnp.float32)

    out = padding_last_1d(x, pad_size, force_pallas=True)
    out = jax.block_until_ready(out)

    ref = jnp.pad(x, ((0, 0), (0, 0), (0, pad_size)))
    assert out.shape == (B, C, L + pad_size), out.shape
    assert out.dtype == x.dtype
    assert jnp.allclose(out, ref), "mismatch vs reference pad (test 1)"

    # --- test 2: multi-block row grid (explicit row_tile, pipelined) --------
    key2 = jax.random.PRNGKey(0)
    B2, C2, L2 = 4, 16, 48       # rows = 64
    pad2 = 16
    x2 = jax.random.normal(key2, (B2, C2, L2), dtype=jnp.float32)

    out2 = padding_last_1d(x2, pad2, row_tile=16, force_pallas=True)
    out2 = jax.block_until_ready(out2)

    ref2 = jnp.pad(x2, ((0, 0), (0, 0), (0, pad2)))
    assert out2.shape == (B2, C2, L2 + pad2), out2.shape
    assert jnp.allclose(out2, ref2), "mismatch vs reference pad (test 2)"

    # --- test 3: auto byte-based tiling with forced multi-step grid ---------
    B3, C3, L3 = 4, 16, 128      # rows = 64 >= 8*sub -> >= 8 grid steps
    pad3 = 32
    x3 = jax.random.normal(jax.random.PRNGKey(0), (B3, C3, L3), dtype=jnp.float32)
    out3 = padding_last_1d(x3, pad3, force_pallas=True)
    out3 = jax.block_until_ready(out3)
    ref3 = jnp.pad(x3, ((0, 0), (0, 0), (0, pad3)))
    assert jnp.allclose(out3, ref3), "mismatch vs reference pad (test 3)"

    # --- test 4: 2-D (row, lane) tiled path (forced small lane tile) --------
    B4, C4, L4 = 2, 8, 384       # rows = 16, lane blocks: in=3, out=4
    pad4 = 64
    x4 = jax.random.normal(jax.random.PRNGKey(0), (B4, C4, L4), dtype=jnp.float32)
    out4 = padding_last_1d(x4, pad4, lane_tile=128, force_pallas=True)
    out4 = jax.block_until_ready(out4)
    ref4 = jnp.pad(x4, ((0, 0), (0, 0), (0, pad4)))
    assert out4.shape == (B4, C4, L4 + pad4), out4.shape
    assert jnp.allclose(out4, ref4), "mismatch vs reference pad (test 4, 2-D path)"

    # --- test 5: tiny-input / lane-sparse fast path (jnp.pad) ---------------
    out5 = padding_last_1d(x, pad_size)          # not forced -> fast path
    out5 = jax.block_until_ready(out5)
    assert jnp.allclose(out5, ref), "mismatch vs reference pad (fast path)"

    print("KERNEL_OK")
</pallas_src>

<mosaic_0001>
module attributes {stable_mosaic.version = 11 : i64} {
  func.func @_pad_last_kernel_1d(%arg0: i32, %arg1: memref<8x16xf32, #tpu.memory_space<vmem>>, %arg2: memref<8x24xf32, #tpu.memory_space<vmem>>) attributes {dimension_semantics = [#tpu.dimension_semantics<parallel>], iteration_bounds = array<i64: 1>, scalar_prefetch = 0 : i64, scratch_operands = 0 : i64, tpu.core_type = #tpu.core_type<tc>, window_params = [{transform_indices = @transform_0, window_bounds = array<i64: 8, 16>}, {transform_indices = @transform_1, window_bounds = array<i64: 8, 24>}]} {
    %c0 = arith.constant 0 : index
    %c0_0 = arith.constant 0 : index
    %0 = vector.load %arg1[%c0, %c0_0] : memref<8x16xf32, #tpu.memory_space<vmem>>, vector<8x16xf32>
    %c0_1 = arith.constant 0 : index
    %c0_2 = arith.constant 0 : index
    %1 = vector.load %arg2[%c0_1, %c0_2] : memref<8x24xf32, #tpu.memory_space<vmem>>, vector<8x16xf32>
    tpu.vector_store %arg2[%c0_1, %c0_2], %0 {strides = array<i32>} : memref<8x24xf32, #tpu.memory_space<vmem>>, vector<8x16xf32>,
    %cst = arith.constant 0.000000e+00 : f32
    %2 = vector.broadcast %cst : f32 to vector<8x8xf32>
    %c0_3 = arith.constant 0 : index
    %c16 = arith.constant 16 : index
    %3 = vector.load %arg2[%c0_3, %c16] : memref<8x24xf32, #tpu.memory_space<vmem>>, vector<8x8xf32>
    tpu.vector_store %arg2[%c0_3, %c16], %2 {strides = array<i32>} : memref<8x24xf32, #tpu.memory_space<vmem>>, vector<8x8xf32>,
    return
  }
  func.func @transform_0(%arg0: i32) -> (i32, i32) {
    %c0_i32 = arith.constant 0 : i32
    %c0_i32_0 = arith.constant 0 : i32
    return %arg0, %c0_i32 : i32, i32
  }
  func.func @transform_1(%arg0: i32) -> (i32, i32) {
    %c0_i32 = arith.constant 0 : i32
    %c0_i32_0 = arith.constant 0 : i32
    return %arg0, %c0_i32 : i32, i32
  }
}

</mosaic_0001>

<bundles_post_ra>
// kernel: tpu_custom_call.1
= control target key start
LH: loop header
LB: loop body
LE: loop exit
PB: predicated region body
PF: predicated region fallthrough
CT: control target
= control target key end

     0   :  { %6 = vsyncpa [#allocation3], 0  ;;  %s119_s0 = inlined_call_operand.hbm [shape: f32[8,16], index: 0, kind: input, shape index: {}]   ;;  %s120_s1 = inlined_call_operand.hbm [shape: f32[8,24], index: 1, kind: output, shape index: {}]  }
   0x1   :  { %7 = vsyncpa [#allocation4], 0  ;;  %s13_s8 = sshll.u32 %s119_s0, 4  ;;  %s100_s9 = smov [#allocation2]   ;;  %s14_s8 = int_to_ptr.hbm [resolvable:$true] %s13_s8 }
   0x2   :  { %s15_s10 = sshll.u32 %s100_s9, 4  ;;  %s16_s10 = int_to_ptr.vmem [resolvable:$true] %s15_s10 }
   0x3   :  { %18 = dma.hbm_to_vmem [thread:$0]  %s14_s8, 128, %s16_s10, [#allocation3]  }
   0x4   :  { %96 = dma.done.wait [#allocation3], 128  }
   0x5   :  { %97 = vsyncadd [#allocation3], 4294967168  ;;  %s101_s11 = smov [#allocation5]   ;;  %s35_s15 = sshll.u32 %s120_s1, 4  ;;  %vm24_vm0 = vcmask 130048   ;;  %vm26_vm1 = vcmask 195712   ;;  %s36_s15 = int_to_ptr.hbm [resolvable:$true] %s35_s15 }
   0x6   :  { %s33_s12 = sshll.u32 %s101_s11, 4  ;;  %v23_v0 = vld [vmem:[#allocation2] sm:$0xff]  ;;  %v102_v1 = vmov 0.0   ;;  %s34_s12 = int_to_ptr.vmem [resolvable:$true] %s33_s12 }
   0x7   :  { %25 = vst.msk [vmem:[#allocation5] sm:$0xff] %vm24_vm0, %v23_v0 }
   0x8   :  { %27 = vst.msk [vmem:[#allocation5] sm:$0xff] %vm26_vm1, %v102_v1 }
   0x9   :  { %38 = dma.vmem_to_hbm [thread:$0]  %s34_s12, 128, %s36_s15, [#allocation4]  }
   0xa   :  { %98 = dma.done.wait [#allocation4], 128  }
   0xb   :  { %99 = vsyncadd [#allocation4], 4294967168 }
   0xc   :  { %43 = vsyncpa [#allocation3], 1 }
   0xd   :  { %44 = vsyncpa [#allocation4], 1 }

</bundles_post_ra>
